<compile_context>
chip_gen: v5e
topology: v5e:2x2
jax: 0.10.0
libtpu: 0.0.40
codegen_flags: <defaults>
</compile_context>

<pallas_src>
import functools

import jax
import jax.numpy as jnp
import numpy as np
from jax.experimental import pallas as pl
from jax.experimental.pallas import tpu as pltpu


# ---------------------------------------------------------------------------
# pass 1: channel max / channel sum
# ---------------------------------------------------------------------------
def _pool_kernel(x_ref, p_ref):
    # x_ref: VMEM (1, C, TH, W)  input tile (any dtype)
    # p_ref: VMEM (1, 2, TH, W)  f32: [0] = channel max, [1] = channel sum
    C = x_ref.shape[1]
    x0 = x_ref[0, 0].astype(jnp.float32)
    maxp = x0
    sump = x0
    for c in range(1, C):                       # per-channel reads; no full f32 copy of x
        xc = x_ref[0, c].astype(jnp.float32)
        maxp = jnp.maximum(maxp, xc)
        sump = sump + xc
    p_ref[0, 0] = maxp
    p_ref[0, 1] = sump


# ---------------------------------------------------------------------------
# pass 2: 5x5 conv + sigmoid gate + x * y
# ---------------------------------------------------------------------------
def _conv_kernel(w_ref, pooled_ref, x_ref, o_ref, shift_ref, *, K, TH):
    # w_ref:      SMEM f32[2*K*K]      flattened [in_ch, kh, kw]; avg channel pre-scaled by 1/C
    # pooled_ref: VMEM (1, 2, H+2P, W) f32 padded pooled planes (whole image, resident per n)
    # x_ref:      VMEM (1, C, TH, W)
    # o_ref:      VMEM (1, C, TH, W)
    # shift_ref:  VMEM (2*K, TH+2P, W) f32 per-kw lane-shifted pooled slabs
    P = (K - 1) // 2
    KK = K * K
    C = x_ref.shape[1]
    W = x_ref.shape[3]
    rows = TH + 2 * P

    h = pl.program_id(1)
    r0 = h * TH
    if TH % 8 == 0:
        r0 = pl.multiple_of(r0, 8)              # aligned sublane window into pooled planes

    # Build the per-kw lane-shifted slabs once (2*K lane relayouts, lane-dense stores).
    for m in range(2):
        plane = pooled_ref[0, m, pl.ds(r0, rows), :]
        for kw in range(K):
            d = kw - P
            if d == 0:
                sh = plane
            elif d > 0:
                sh = jnp.concatenate(
                    [plane[:, d:], jnp.zeros((rows, d), jnp.float32)], axis=1)
            else:
                sh = jnp.concatenate(
                    [jnp.zeros((rows, -d), jnp.float32), plane[:, :W + d]], axis=1)
            shift_ref[m * K + kw] = sh

    # 5x5 conv: sublane-offset loads + scalar*vector mul/add, two independent chains (ILP).
    acc_max = jnp.zeros((TH, W), jnp.float32)
    acc_avg = jnp.zeros((TH, W), jnp.float32)
    for kh in range(K):
        for kw in range(K):
            acc_max = acc_max + w_ref[kh * K + kw] * shift_ref[kw, kh:kh + TH, :]
            acc_avg = acc_avg + w_ref[KK + kh * K + kw] * shift_ref[K + kw, kh:kh + TH, :]
    acc = acc_max + acc_avg

    # sigmoid via EUP tanh (no VALU divide)
    y = 0.5 * jnp.tanh(0.5 * acc) + 0.5

    # gate each channel; re-read x_ref per channel instead of holding a full f32 copy
    for c in range(C):
        o_ref[0, c] = (x_ref[0, c].astype(jnp.float32) * y).astype(o_ref.dtype)


# ---------------------------------------------------------------------------
# wrapper
# ---------------------------------------------------------------------------
def _choose_tile_h(H, C, W, itemsize, target_bytes=2 << 20):
    """Smallest H-tile (multiple of 8, dividing H) whose x-tile moves ~target_bytes."""
    if H % 8 != 0:
        return H
    cands = [th for th in range(8, H + 1, 8) if H % th == 0]
    if not cands:
        return H
    per_row = max(C * W * itemsize, 1)
    for th in cands:                             # ascending
        if th * per_row >= target_bytes:
            return th
    return cands[-1]                             # even full H is below target -> one tile


def _vmem_limit(needed_bytes):
    cap = 64 << 20
    try:
        cap = int(getattr(pltpu.get_tpu_info(), "vmem_capacity_bytes", cap))
    except Exception:
        pass
    budget = int(cap * 0.8)                      # headroom for Mosaic internal scratch
    return int(min(max(needed_bytes, 16 << 20), budget))


def sa_layer(x, conv_weight, kernel_size=5):
    """x: [N, C, H, W]; conv_weight: [1, 2, K, K] (bias=False)."""
    N, C, H, W = x.shape
    K = int(kernel_size)
    P = (K - 1) // 2
    assert conv_weight.shape == (1, 2, K, K)
    assert W >= K, "W must be >= kernel_size for the lane-shift construction"

    itemsize = jnp.dtype(x.dtype).itemsize
    TH = _choose_tile_h(H, C, W, itemsize)
    nH = H // TH
    Hp = H + 2 * P
    tile_x_bytes = C * TH * W * itemsize

    # Fold the mean's 1/C into the avg-channel conv weights; flatten as [in_ch, kh, kw].
    w = conv_weight.astype(jnp.float32)
    w = w.at[:, 1, :, :].multiply(1.0 / C)
    w_flat = w.reshape(-1)

    # ---- pass 1: pooled planes -------------------------------------------------
    pool_vmem_bytes = (2 * tile_x_bytes          # x tile, double-buffered
                       + 2 * 2 * TH * W * 4      # pooled tile, double-buffered
                       + 4 * TH * W * 4          # f32 temporaries
                       + (1 << 20))
    pooled = pl.pallas_call(
        _pool_kernel,
        out_shape=jax.ShapeDtypeStruct((N, 2, H, W), jnp.float32),
        grid_spec=pltpu.PrefetchScalarGridSpec(
            num_scalar_prefetch=0,
            grid=(N, nH),
            in_specs=[pl.BlockSpec((1, C, TH, W), lambda n, h: (n, 0, h, 0))],
            out_specs=pl.BlockSpec((1, 2, TH, W), lambda n, h: (n, 0, h, 0)),
        ),
        compiler_params=pltpu.CompilerParams(
            dimension_semantics=("parallel", "parallel"),
            vmem_limit_bytes=_vmem_limit(pool_vmem_bytes),
        ),
    )(x)

    # Bake the SAME-conv zero halo into the pooled planes (cheap: 2 planes only).
    pooled_pad = jnp.pad(pooled, ((0, 0), (0, 0), (P, P), (0, 0)))

    # ---- pass 2: conv + sigmoid + gate ------------------------------------------
    conv_vmem_bytes = (2 * 2 * Hp * W * 4                # padded pooled planes, double-buffered
                       + 4 * tile_x_bytes                # x in + out tiles, double-buffered
                       + 2 * K * (TH + 2 * P) * W * 4    # shift scratch
                       + 8 * (TH + 2 * P) * W * 4        # f32 temporaries (plane, accs, y)
                       + (2 << 20))
    out = pl.pallas_call(
        functools.partial(_conv_kernel, K=K, TH=TH),
        out_shape=jax.ShapeDtypeStruct((N, C, H, W), x.dtype),
        grid_spec=pltpu.PrefetchScalarGridSpec(
            num_scalar_prefetch=0,
            grid=(N, nH),
            in_specs=[
                pl.BlockSpec(memory_space=pltpu.MemorySpace.SMEM),       # conv weights (scalars)
                pl.BlockSpec((1, 2, Hp, W), lambda n, h: (n, 0, 0, 0)),  # pooled planes, per-n resident
                pl.BlockSpec((1, C, TH, W), lambda n, h: (n, 0, h, 0)),  # x tile
            ],
            out_specs=pl.BlockSpec((1, C, TH, W), lambda n, h: (n, 0, h, 0)),
            scratch_shapes=[pltpu.VMEM((2 * K, TH + 2 * P, W), jnp.float32)],
        ),
        compiler_params=pltpu.CompilerParams(
            dimension_semantics=("parallel", "parallel"),
            vmem_limit_bytes=_vmem_limit(conv_vmem_bytes),
        ),
    )(w_flat, pooled_pad, x)
    return out


# ---------------------------------------------------------------------------
# reference + test
# ---------------------------------------------------------------------------
def _reference(x, conv_weight):
    maxp = jnp.max(x, axis=1, keepdims=True)
    avgp = jnp.mean(x, axis=1, keepdims=True)
    cp = jnp.concatenate([maxp, avgp], axis=1)                  # (N, 2, H, W)
    y = jax.lax.conv_general_dilated(
        cp, conv_weight, window_strides=(1, 1), padding="SAME",
        dimension_numbers=("NCHW", "OIHW", "NCHW"))
    y = jax.nn.sigmoid(y)                                       # (N, 1, H, W)
    return x * y


if __name__ == "__main__":
    key = jax.random.PRNGKey(0)
    kx, kw_key = jax.random.split(key)

    N, C, H, W = 2, 4, 16, 16
    K = 5

    x = jax.random.normal(kx, (N, C, H, W), dtype=jnp.float32)
    fan_in = 2 * K * K
    conv_weight = jax.random.normal(kw_key, (1, 2, K, K), dtype=jnp.float32) / np.sqrt(fan_in)

    out = jax.block_until_ready(sa_layer(x, conv_weight, kernel_size=K))

    ref = _reference(x, conv_weight)
    np.testing.assert_allclose(np.asarray(out), np.asarray(ref), rtol=1e-5, atol=2e-5)

    print("KERNEL_OK")
</pallas_src>

<mosaic_0001>
module attributes {stable_mosaic.version = 11 : i64} {
  func.func @_pool_kernel(%arg0: i32, %arg1: i32, %arg2: memref<1x4x16x16xf32, #tpu.memory_space<vmem>>, %arg3: memref<1x2x16x16xf32, #tpu.memory_space<vmem>>) attributes {dimension_semantics = [#tpu.dimension_semantics<parallel>, #tpu.dimension_semantics<parallel>], iteration_bounds = array<i64: 2, 1>, scalar_prefetch = 0 : i64, scratch_operands = 0 : i64, tpu.core_type = #tpu.core_type<tc>, window_params = [{transform_indices = @transform_0, window_bounds = array<i64: 1, 4, 16, 16>}, {transform_indices = @transform_1, window_bounds = array<i64: 1, 2, 16, 16>}]} {
    %c0 = arith.constant 0 : index
    %c0_0 = arith.constant 0 : index
    %c0_1 = arith.constant 0 : index
    %c0_2 = arith.constant 0 : index
    %0 = vector.load %arg2[%c0, %c0_0, %c0_1, %c0_2] : memref<1x4x16x16xf32, #tpu.memory_space<vmem>>, vector<1x1x16x16xf32>
    %1 = vector.shape_cast %0 : vector<1x1x16x16xf32> to vector<16x16xf32>
    %c0_3 = arith.constant 0 : index
    %c1 = arith.constant 1 : index
    %c0_4 = arith.constant 0 : index
    %c0_5 = arith.constant 0 : index
    %2 = vector.load %arg2[%c0_3, %c1, %c0_4, %c0_5] : memref<1x4x16x16xf32, #tpu.memory_space<vmem>>, vector<1x1x16x16xf32>
    %3 = vector.shape_cast %2 : vector<1x1x16x16xf32> to vector<16x16xf32>
    %4 = arith.maximumf %1, %3 : vector<16x16xf32>
    %5 = arith.addf %1, %3 : vector<16x16xf32>
    %c0_6 = arith.constant 0 : index
    %c2 = arith.constant 2 : index
    %c0_7 = arith.constant 0 : index
    %c0_8 = arith.constant 0 : index
    %6 = vector.load %arg2[%c0_6, %c2, %c0_7, %c0_8] : memref<1x4x16x16xf32, #tpu.memory_space<vmem>>, vector<1x1x16x16xf32>
    %7 = vector.shape_cast %6 : vector<1x1x16x16xf32> to vector<16x16xf32>
    %8 = arith.maximumf %4, %7 : vector<16x16xf32>
    %9 = arith.addf %5, %7 : vector<16x16xf32>
    %c0_9 = arith.constant 0 : index
    %c3 = arith.constant 3 : index
    %c0_10 = arith.constant 0 : index
    %c0_11 = arith.constant 0 : index
    %10 = vector.load %arg2[%c0_9, %c3, %c0_10, %c0_11] : memref<1x4x16x16xf32, #tpu.memory_space<vmem>>, vector<1x1x16x16xf32>
    %11 = vector.shape_cast %10 : vector<1x1x16x16xf32> to vector<16x16xf32>
    %12 = arith.maximumf %8, %11 : vector<16x16xf32>
    %13 = arith.addf %9, %11 : vector<16x16xf32>
    %c0_12 = arith.constant 0 : index
    %c0_13 = arith.constant 0 : index
    %c0_14 = arith.constant 0 : index
    %c0_15 = arith.constant 0 : index
    %14 = vector.load %arg3[%c0_12, %c0_13, %c0_14, %c0_15] : memref<1x2x16x16xf32, #tpu.memory_space<vmem>>, vector<1x1x16x16xf32>
    %15 = vector.shape_cast %14 : vector<1x1x16x16xf32> to vector<16x16xf32>
    %16 = vector.shape_cast %12 : vector<16x16xf32> to vector<1x1x16x16xf32>
    tpu.vector_store %arg3[%c0_12, %c0_13, %c0_14, %c0_15], %16 {strides = array<i32>} : memref<1x2x16x16xf32, #tpu.memory_space<vmem>>, vector<1x1x16x16xf32>,
    %c0_16 = arith.constant 0 : index
    %c1_17 = arith.constant 1 : index
    %c0_18 = arith.constant 0 : index
    %c0_19 = arith.constant 0 : index
    %17 = vector.load %arg3[%c0_16, %c1_17, %c0_18, %c0_19] : memref<1x2x16x16xf32, #tpu.memory_space<vmem>>, vector<1x1x16x16xf32>
    %18 = vector.shape_cast %17 : vector<1x1x16x16xf32> to vector<16x16xf32>
    %19 = vector.shape_cast %13 : vector<16x16xf32> to vector<1x1x16x16xf32>
    tpu.vector_store %arg3[%c0_16, %c1_17, %c0_18, %c0_19], %19 {strides = array<i32>} : memref<1x2x16x16xf32, #tpu.memory_space<vmem>>, vector<1x1x16x16xf32>,
    return
  }
  func.func @transform_0(%arg0: i32, %arg1: i32) -> (i32, i32, i32, i32) {
    %c0_i32 = arith.constant 0 : i32
    %c0_i32_0 = arith.constant 0 : i32
    %c0_i32_1 = arith.constant 0 : i32
    return %arg0, %c0_i32, %arg1, %c0_i32_0 : i32, i32, i32, i32
  }
  func.func @transform_1(%arg0: i32, %arg1: i32) -> (i32, i32, i32, i32) {
    %c0_i32 = arith.constant 0 : i32
    %c0_i32_0 = arith.constant 0 : i32
    %c0_i32_1 = arith.constant 0 : i32
    return %arg0, %c0_i32, %arg1, %c0_i32_0 : i32, i32, i32, i32
  }
}

</mosaic_0001>

<bundles_post_ra>
// kernel: tpu_custom_call.1
= control target key start
LH: loop header
LB: loop body
LE: loop exit
PB: predicated region body
PF: predicated region fallthrough
CT: control target
= control target key end

     0   :  { %6 = vsyncpa [#allocation3], 0  ;;  %s631_s0 = inlined_call_operand.hbm [shape: f32[2,4,16,16], index: 0, kind: input, shape index: {}]   ;;  %s632_s1 = inlined_call_operand.hbm [shape: f32[2,2,16,16], index: 1, kind: output, shape index: {}]  }
   0x1   :  { %8 = vsyncpa [#allocation3 + $0x1], 0 }
   0x2   :  { %9 = vsyncpa [#allocation4], 0 }
   0x3   :  { %11 = vsyncpa [#allocation4 + $0x1], 0  ;;  %s510_s6 = smov 0   ;;  %s512_s7 = smov 0  }
   0x4   :  { %s514_s8 = smov 0   ;;  %s516_s9 = smov 0  }
   0x5   :  { %s518_s10 = smov 0   ;;  %s520_s11 = smov 0  }
   0x6 LB: > { %s291_s12 = sadd.s32 4294967295, %s494_s11   ;;  %s292_s13 = sadd.s32 4294967294, %s494_s11   ;;  %s494_s11 = sphi %s520_s11, %s17_s11   ;;  %s490_s10 = sphi %s518_s10, %s641_s10   ;;  %s486_s9 = sphi %s516_s9, %s640_s9   ;;  %s482_s8 = sphi %s514_s8, %s639_s8   ;;  %s478_s7 = sphi %s512_s7, %s638_s7   ;;  %s474_s6 = sphi %s510_s6, %s637_s6  }
   0x7   : > { %s29_s14 = sadd.s32 1, %s490_s10  ;;  %s38_s15 = sadd.s32 1, %s482_s8 }
   0x8   : > { %p31_p0 = scmp.ge.s32.totalorder %s29_s14, 2  ;;  %p45_p1 = scmp.ne.s32.totalorder %s482_s8, %s478_s7 }
   0x9   : > { %p46_p2 = scmp.eq.s32.totalorder %s494_s11, 0  ;;  %p51_p3 = scmp.ne.s32.totalorder %s478_s7, %s474_s6 }
   0xa   : > { %s643_s14 = smov (%p31_p0, %s29_s14), 0  ;;  %p52_p5 = scmp.eq.s32.totalorder %s291_s12, 0 }
   0xb   : > { %p551_p4 = por %p46_p2, %p45_p1  ;;  %s33_s17 = ssub.s32 %s490_s10, %s643_s14 }
   0xc   : > { %p77_p6 = scmp.eq.s32.totalorder %s291_s12, 1  ;;  %p36_p7 = scmp.eq.s32.totalorder %s33_s17, 0 }
   0xd   : > { %p557_p8 = por %p52_p5, %p51_p3  ;;  %p83_p10 = scmp.eq.s32.totalorder %s292_s13, 1 }
   0xe   : > { %p561_p9 = por %p77_p6, %p45_p1  ;;  %p294_p12 = scmp.ge.s32.totalorder %s494_s11, 2 }
   0xf   : > { %s566_s20 = scalar_select %p36_p7, %s482_s8, %s38_s15  }
  0x10   : > { %p568_p11 = por %p83_p10, %p51_p3  ;;  %p328_p13 = scmp.lt.s32.totalorder %s494_s11, 2 }
  0x11   : > { %s103_s22 = sand.u32 1, %s482_s8   ;;  %s314_s24 = sshll.u32 %s490_s10, 6 }
  0x12   : > { %s295_s23 = sshll.u32 %s103_s22, 6  ;;  %s114_s27 = scalar_lea.hbm %s631_s0, %s314_s24 }
  0x13   : > { %s107_s28 = scalar_lea.vmem [#allocation2], %s295_s23  ;;  %s115_s30 = sshll.u32 %s114_s27, 4  ;;  %s116_s30 = int_to_ptr.hbm [resolvable:$true] %s115_s30 }
  0x14   : > { %s117_s29 = sshll.u32 %s107_s28, 4  ;;  %p321_p0 = pnand %p328_p13, %p551_p4  ;;  %s118_s29 = int_to_ptr.vmem [resolvable:$true] %s117_s29 }
  0x15   : > { %p298_p1 = scmp.ge.s32.totalorder %s494_s11, 1  ;;  %s104_s2 = scalar_lea.sflag [#allocation3], %s103_s22 }
  0x16   : > { %s496_s3 = smov 128   ;;  %s497_s4 = smov 8  }
  0x17   : > { %323 = dma.hbm_to_vmem [thread:$0]  (!%p321_p0), %s116_s30, 1024, %s118_s29, %s104_s2, %s496_s3, %s496_s3, %s497_s4  }
  0x18   : > { %p125_p2 = scmp.lt.s32.totalorder %s494_s11, 3 }
  0x1a   : > { %p126_p3 = pnand %p298_p1, %p125_p2 }
  0x1b   : > { %s584_s5 = sand.u32 (!%p126_p3), 1, %s478_s7  }
  0x1c   : > { %129 = sbr.rel (%p126_p3) target bundleno = 50 (0x32), region = 24  ;;  %s299_s12 = sshll.u32 (!%p126_p3), %s584_s5, 6 }
  0x1d   : > { %s132_s13 = scalar_lea.sflag (!%p126_p3), [#allocation3], %s584_s5  ;;  %s135_s15 = scalar_lea.vmem (!%p126_p3), [#allocation2], %s299_s12 }
  0x21   : > { %465 = dma.done.wait (%p557_p8), %s132_s13, 1024  }
  0x22   : > { %467 = vsyncadd (%p557_p8), %s132_s13, 4294966272  ;;  %s300_s16 = sshll.u32 %s584_s5, 5  ;;  %s315_s17 = sshll.u32 %s486_s9, 5  ;;  %v157_v0 = vld [vmem:[%s135_s15] sm:$0xff]  ;;  %v301_v1 = vld [vmem:[%s135_s15 + $0x10] sm:$0xff]  ;;  %vm180_vm0 = vcmask 130048  }
  0x23   : > { %v303_v2 = vld [vmem:[%s135_s15 + $0x20] sm:$0xff]  ;;  %v162_v3 = vmax.f32 %v157_v0, %v301_v1  ;;  %v158_v4 = vld [vmem:[%s135_s15 + $0x8] sm:$0xff]  ;;  %v302_v5 = vld [vmem:[%s135_s15 + $0x18] sm:$0xff]  ;;  %v164_v6 = vadd.f32 %v301_v1, %v157_v0  ;;  %s200_s24 = scalar_lea.hbm %s632_s1, %s315_s17  ;;  %s154_s9 = scalar_lea.vmem [#allocation5], %s300_s16 }
  0x24   : > { %v305_v7 = vld [vmem:[%s135_s15 + $0x30] sm:$0xff]  ;;  %v163_v8 = vmax.f32 %v158_v4, %v302_v5  ;;  %v304_v9 = vld [vmem:[%s135_s15 + $0x28] sm:$0xff]  ;;  %v165_v10 = vadd.f32 %v302_v5, %v158_v4  ;;  %v306_v12 = vld [vmem:[%s135_s15 + $0x38] sm:$0xff]  ;;  %s201_s18 = sshll.u32 %s154_s9, 4  ;;  %s203_s25 = sshll.u32 %s200_s24, 4  ;;  %s202_s18 = int_to_ptr.vmem [resolvable:$true] %s201_s18  ;;  %s204_s25 = int_to_ptr.hbm [resolvable:$true] %s203_s25 }
  0x25   : > { %v169_v11 = vmax.f32 %v162_v3, %v303_v2  ;;  %v171_v13 = vadd.f32 %v303_v2, %v164_v6  ;;  %s187_s26 = scalar_lea.sflag [#allocation4], %s584_s5  ;;  %s426_s27 = sshra.s32 %s204_s25, 4  ;;  %s427_s27 = int_to_ptr.hbm [resolvable:$true] %s426_s27 }
  0x26   : > { %v170_v14 = vmax.f32 %v163_v8, %v304_v9  ;;  %v172_v15 = vadd.f32 %v304_v9, %v165_v10  ;;  %s428_s28 = scalar_lea.hbm %s427_s27, 32  ;;  %s432_s2 = scalar_lea.hbm %s632_s1, 64 }
  0x27   : > { %v176_v16 = vmax.f32 %v169_v11, %v305_v7  ;;  %v178_v17 = vadd.f32 %v305_v7, %v171_v13  ;;  %p429_p4 = scmp.ne.s32.totalorder %s427_s27, %s428_s28  ;;  %p433_p7 = scmp.lt.s32.totalorder %s427_s27, %s632_s1 }
  0x28   : > { %v177_v18 = vmax.f32 %v170_v14, %v306_v12  ;;  %v179_v19 = vadd.f32 %v306_v12, %v172_v15  ;;  %p434_p8 = scmp.lt.s32.totalorder %s432_s2, %s428_s28 }
  0x29   : > { %181 = vst.msk [vmem:[%s154_s9] sm:$0xff] %vm180_vm0, %v176_v16  ;;  %p430_p5 = pnand %p429_p4, %p561_p9 }
  0x2a   : > { %182 = vst.msk [vmem:[%s154_s9 + $0x8] sm:$0xff] %vm180_vm0, %v177_v18  ;;  %p435_p10 = por %p434_p8, %p433_p7 }
  0x2b   : > { %307 = vst.msk [vmem:[%s154_s9 + $0x10] sm:$0xff] %vm180_vm0, %v178_v17  ;;  %p431_p6 = pneg %p430_p5 }
  0x2c   : > { %308 = vst.msk [vmem:[%s154_s9 + $0x18] sm:$0xff] %vm180_vm0, %v179_v19 }
  0x2d   : > { %p436_p13 = pnand %p435_p10, %p431_p6 }
  0x2f   : > { %439 = shalt.err (!%p436_p13)
}
  0x30   : > { %s498_s5 = smov 128   ;;  %s499_s12 = smov 8  }
  0x31   : > { %318 = dma.vmem_to_hbm [thread:$0]  (%p561_p9), %s202_s18, 512, %s204_s25, %s187_s26, %s498_s5, %s498_s5, %s499_s12  }
  0x32 PF: > { %s218_s13 = sand.u32 1, %s474_s6   ;;  %p325_p0 = pnand %p294_p12, %p568_p11 }
  0x33   : > { %s219_s15 = scalar_lea.sflag [#allocation4], %s218_s13 }
  0x34   : > { %p326_p1 = pneg %p325_p0 }
  0x36   : > { %469 = dma.done.wait (%p326_p1), %s219_s15, 512  }
  0x37   : > { %471 = vsyncadd (%p326_p1), %s219_s15, 4294966784  ;;  %s17_s11 = sadd.s32 1, %s494_s11   ;;  %s637_s6 = smov %s478_s7 }
  0x38   : > { %p14_p2 = scmp.ge.s32.totalorder %s17_s11, 4   ;;  %s638_s7 = smov %s482_s8 }
  0x39   : > { %s639_s8 = smov %s566_s20  ;;  %s640_s9 = smov %s490_s10 }
  0x3a   : > { %s641_s10 = smov %s643_s14  ;;  %16 = sbr.rel (!%p14_p2) target bundleno = 6 (0x6), region = 73 }
  0x3f   :  { %225 = vsyncpa [#allocation3], 1 }
  0x40   :  { %227 = vsyncpa [#allocation3 + $0x1], 1 }
  0x41   :  { %228 = vsyncpa [#allocation4], 1 }
  0x42   :  { %230 = vsyncpa [#allocation4 + $0x1], 1 }

</bundles_post_ra>
